<compile_context>
chip_gen: v6e
topology: v6e:2x2x1
jax: 0.10.0
libtpu: 0.0.40
codegen_flags: <defaults>
</compile_context>

<pallas_src>
import functools

import jax
import jax.numpy as jnp
from jax.experimental import pallas as pl
from jax.experimental.pallas import tpu as pltpu


def _vmem_capacity_bytes():
    try:
        return int(pltpu.get_tpu_info().vmem_capacity_bytes)
    except Exception:
        return 64 * 1024 * 1024  # conservative default (v7x physical VMEM)


def _attention_kernel(x_ref, w_ref, b_ref, gamma_ref, o_ref,
                      proj_scr, acc_scr, *, cqk, block_m):
    m = pl.program_id(1)

    # Once per batch element: fused QKV projection straight into the bf16
    # scratch + accumulator reset.
    @pl.when(m == 0)
    def _init():
        x_bf = x_ref[0].astype(jnp.bfloat16)                              # (C, N)
        proj = jnp.dot(w_ref[...], x_bf,                                   # bf16 @ bf16
                       preferred_element_type=jnp.float32) + b_ref[...]    # (P, N) f32
        proj_scr[...] = proj.astype(jnp.bfloat16)
        acc_scr[...] = jnp.zeros_like(acc_scr)

    col0 = pl.multiple_of(m * block_m, block_m)
    q_t = proj_scr[0:cqk, pl.ds(col0, block_m)]            # (Cq, BM) bf16 (zero-padded rows)
    k = proj_scr[cqk:2 * cqk, :]                           # (Cq, N)  bf16
    v_t = proj_scr[2 * cqk:, pl.ds(col0, block_m)]         # (C,  BM) bf16

    # scores s[i, n] = sum_c q[c, col0 + i] * k[c, n]; padded channels are 0.
    s = jax.lax.dot_general(q_t, k, (((0,), (0,)), ((), ())),
                            preferred_element_type=jnp.float32)            # (BM, N) f32

    # Exact row softmax over the key axis (each row sees all N keys). f32 VPU/EUP.
    s_max = jnp.max(s, axis=-1, keepdims=True)
    e = jnp.exp(s - s_max)
    denom = jnp.sum(e, axis=-1, keepdims=True)
    a = (e * pl.reciprocal(denom)).astype(jnp.bfloat16)                    # (BM, N) bf16

    # out[c, n] += sum_i v[c, col0 + i] * a[i, n]   (bf16 MXU, f32 accumulate)
    acc_scr[...] += jnp.dot(v_t, a, preferred_element_type=jnp.float32)    # (C, N)

    @pl.when(m == pl.num_programs(1) - 1)
    def _finish():
        gamma = gamma_ref[0, 0]
        o_ref[0] = (gamma * acc_scr[...]
                    + x_ref[0].astype(jnp.float32)).astype(o_ref.dtype)


def attention_forward(x_nchw, params, block_m=None):
    """x_nchw: (B, C, H, W). params: dict with wq,bq,wk,bk,wv,bv,gamma."""
    B, C, H, W = x_nchw.shape
    N = H * W
    C8 = params["wq"].shape[0]

    vmem_cap = _vmem_capacity_bytes()

    # Query-block tile over the m axis, sized per VMEM generation.
    if block_m is None:
        if vmem_cap >= 100 * 1024 * 1024:        # v5e / v6e: 128 MiB physical
            candidates = (1024, 512, 256, 128)
        elif N >= 4096:                          # v7x (64 MiB) at large N
            candidates = (256, 128)
        else:
            candidates = (512, 256, 128)
        block_m = N
        for cand in candidates:
            if cand <= N and N % cand == 0:
                block_m = cand
                break
    if N % block_m != 0:
        raise ValueError(f"block_m={block_m} must divide N={N}")

    x_cn = x_nchw.reshape(B, C, N)               # channel-first, no transpose

    # Fused (and sublane-tile padded) QKV weights / biases.  Padded rows are
    # zero -> their projections are exactly 0 and never affect the scores.
    cqk = ((C8 + 15) // 16) * 16                 # bf16 sublane-tile multiple
    pad = cqk - C8
    zw = jnp.zeros((pad, C), jnp.float32)
    zb = jnp.zeros((pad,), jnp.float32)
    w_all = jnp.concatenate(
        [params["wq"], zw, params["wk"], zw, params["wv"]],
        axis=0).astype(jnp.bfloat16)                                   # (P, C) bf16
    b_all = jnp.concatenate(
        [params["bq"], zb, params["bk"], zb, params["bv"]],
        axis=0).reshape(-1, 1).astype(jnp.float32)                     # (P, 1) f32
    P = 2 * cqk + C
    gamma = params["gamma"].reshape(1, 1).astype(jnp.float32)

    # Rough VMEM budget: score/exp slabs + fused bf16 scratch + f32 acc +
    # double-buffered x/o blocks + weights.  Ask for ~2x headroom but never
    # more than ~80% of physical VMEM (leaves compiler scratch room on v7x,
    # uses the full 128 MiB generations on v5e/v6e).
    itemsize = x_cn.dtype.itemsize
    est_bytes = (4 * 4 * block_m * N              # f32 score/exp slabs (+ bf16 copy headroom)
                 + 2 * P * N                      # fused q/k/v scratch (bf16)
                 + 4 * C * N                      # f32 output accumulator
                 + 2 * 2 * C * N * itemsize       # double-buffered x and o blocks
                 + 2 * (2 * P * C + 4 * P))       # bf16 weights + f32 bias (double-buffered)
    vmem_limit = int(min(max(2 * est_bytes, 32 * 1024 * 1024),
                         int(0.8 * vmem_cap)))

    kernel = functools.partial(_attention_kernel, cqk=cqk, block_m=block_m)

    out_cn = pl.pallas_call(
        kernel,
        out_shape=jax.ShapeDtypeStruct((B, C, N), x_nchw.dtype),
        grid_spec=pltpu.PrefetchScalarGridSpec(
            num_scalar_prefetch=0,
            grid=(B, N // block_m),
            in_specs=[
                pl.BlockSpec((1, C, N), lambda b, m: (b, 0, 0)),       # x (full image per batch)
                pl.BlockSpec((P, C), lambda b, m: (0, 0)),             # fused [Wq;0;Wk;0;Wv] bf16
                pl.BlockSpec((P, 1), lambda b, m: (0, 0)),             # fused bias f32
                pl.BlockSpec(memory_space=pltpu.MemorySpace.SMEM),     # gamma scalar
            ],
            out_specs=pl.BlockSpec((1, C, N), lambda b, m: (b, 0, 0)),
            scratch_shapes=[
                pltpu.VMEM((P, N), jnp.bfloat16),   # fused q/k/v (per batch)
                pltpu.VMEM((C, N), jnp.float32),    # output accumulator
            ],
        ),
        compiler_params=pltpu.CompilerParams(
            dimension_semantics=("parallel", "arbitrary"),
            vmem_limit_bytes=vmem_limit,
        ),
    )(x_cn, w_all, b_all, gamma)

    return out_cn.reshape(B, C, H, W)


def attention_reference(x, params):
    """Plain-JAX mirror of the PyTorch forward (NCHW, no permute on attention)."""
    B, C, H, W = x.shape
    N = H * W

    def conv1x1(x, w, b):  # w: (Co, C), b: (Co,)
        return jnp.einsum("oc,bchw->bohw", w, x) + b[None, :, None, None]

    q = conv1x1(x, params["wq"], params["bq"]).reshape(B, -1, N)
    k = conv1x1(x, params["wk"], params["bk"]).reshape(B, -1, N)
    v = conv1x1(x, params["wv"], params["bv"]).reshape(B, -1, N)
    attn = jnp.einsum("bcn,bcm->bnm", q, k)            # query^T @ key
    attn = jax.nn.softmax(attn, axis=-1)
    out = jnp.einsum("bcm,bmn->bcn", v, attn)          # value @ attention
    out = out.reshape(B, -1, H, W)
    return params["gamma"][0] * out + x


def init_params(key, in_channels):
    c8 = in_channels // 8
    k1, k2, k3, k4, k5, k6 = jax.random.split(key, 6)
    return {
        # Conv2d(kernel_size=1) weights, stored as (out_channels, in_channels)
        "wq": 0.1 * jax.random.normal(k1, (c8, in_channels), jnp.float32),
        "bq": 0.1 * jax.random.normal(k2, (c8,), jnp.float32),
        "wk": 0.1 * jax.random.normal(k3, (c8, in_channels), jnp.float32),
        "bk": 0.1 * jax.random.normal(k4, (c8,), jnp.float32),
        "wv": 0.1 * jax.random.normal(k5, (in_channels, in_channels), jnp.float32),
        "bv": 0.1 * jax.random.normal(k6, (in_channels,), jnp.float32),
        # nn.Parameter(torch.zeros(1)) -- matches module __init__
        "gamma": jnp.zeros((1,), jnp.float32),
    }


if __name__ == "__main__":
    B, C, H, W = 2, 32, 16, 16        # in_channels=32 -> query/key channels = 4
    key = jax.random.PRNGKey(0)
    kx, kp = jax.random.split(key)
    x = jax.random.normal(kx, (B, C, H, W), jnp.float32)
    params = init_params(kp, C)

    # Module-default gamma (= 0): output must equal x.  block_m=128 -> 2 m
    # steps, exercising the accumulator init / accumulate / finalize path.
    out = attention_forward(x, params, block_m=128)
    jax.block_until_ready(out)
    ref = attention_reference(x, params)
    assert out.shape == x.shape
    assert jnp.allclose(out, ref, atol=1e-5, rtol=1e-5)

    # Non-zero gamma exercises the full attention path.  Tolerance is relaxed
    # because all matmul operands (q/k/v/probabilities) now run through the
    # MXU in bfloat16 (f32 accumulation).
    params_nz = dict(params, gamma=jnp.full((1,), 0.7, jnp.float32))
    out_nz = attention_forward(x, params_nz, block_m=128)
    jax.block_until_ready(out_nz)
    ref_nz = attention_reference(x, params_nz)
    assert jnp.allclose(out_nz, ref_nz, atol=8e-2, rtol=2e-2)

    # Auto tile pick (single m step at N=256) must also match.
    out_nz_auto = attention_forward(x, params_nz)
    jax.block_until_ready(out_nz_auto)
    assert jnp.allclose(out_nz_auto, ref_nz, atol=8e-2, rtol=2e-2)

    print("KERNEL_OK")
</pallas_src>

<mosaic_0001>
module attributes {stable_mosaic.version = 11 : i64} {
  func.func @_attention_kernel(%arg0: i32, %arg1: i32, %arg2: memref<1x32x256xf32, #tpu.memory_space<vmem>>, %arg3: memref<64x32xbf16, #tpu.memory_space<vmem>>, %arg4: memref<64x1xf32, #tpu.memory_space<vmem>>, %arg5: memref<1x1xf32, #tpu.memory_space<smem>>, %arg6: memref<1x32x256xf32, #tpu.memory_space<vmem>>, %arg7: memref<64x256xbf16, #tpu.memory_space<vmem>>, %arg8: memref<32x256xf32, #tpu.memory_space<vmem>>) attributes {dimension_semantics = [#tpu.dimension_semantics<parallel>, #tpu.dimension_semantics<arbitrary>], iteration_bounds = array<i64: 2, 2>, scalar_prefetch = 0 : i64, scratch_operands = 2 : i64, tpu.core_type = #tpu.core_type<tc>, window_params = [{transform_indices = @transform_0, window_bounds = array<i64: 1, 32, 256>}, {pipeline_mode = #tpu.pipeline_mode<synchronous>, transform_indices = @transform_1, window_bounds = array<i64: 64, 32>}, {pipeline_mode = #tpu.pipeline_mode<synchronous>, transform_indices = @transform_2, window_bounds = array<i64: 64, 1>}, {transform_indices = @transform_3, window_bounds = array<i64: 1, 1>}, {transform_indices = @transform_4, window_bounds = array<i64: 1, 32, 256>}]} {
    %c0_i32 = arith.constant 0 : i32
    %0 = arith.cmpi eq, %arg1, %c0_i32 : i32
    %1 = arith.extui %0 : i1 to i32
    %c0_i32_0 = arith.constant 0 : i32
    %2 = arith.cmpi ne, %1, %c0_i32_0 : i32
    scf.if %2 {
      %c0_10 = arith.constant 0 : index
      %c0_11 = arith.constant 0 : index
      %c0_12 = arith.constant 0 : index
      %29 = vector.load %arg2[%c0_10, %c0_11, %c0_12] : memref<1x32x256xf32, #tpu.memory_space<vmem>>, vector<1x32x256xf32>
      %30 = vector.shape_cast %29 : vector<1x32x256xf32> to vector<32x256xf32>
      %31 = arith.truncf %30 : vector<32x256xf32> to vector<32x256xbf16>
      %c0_13 = arith.constant 0 : index
      %c0_14 = arith.constant 0 : index
      %32 = vector.load %arg3[%c0_13, %c0_14] : memref<64x32xbf16, #tpu.memory_space<vmem>>, vector<64x32xbf16>
      %cst_15 = arith.constant dense<0.000000e+00> : vector<64x256xf32>
      %33 = tpu.matmul %32, %31, %cst_15 {dimension_numbers = #tpu.dot_dimension_numbers<[1], [0], [0], [1], [0, 0, 1, 1], [], []>} : vector<64x32xbf16>, vector<32x256xbf16>, vector<64x256xf32> -> vector<64x256xf32>
      %c0_16 = arith.constant 0 : index
      %c0_17 = arith.constant 0 : index
      %34 = vector.load %arg4[%c0_16, %c0_17] : memref<64x1xf32, #tpu.memory_space<vmem>>, vector<64x1xf32>
      %35 = vector.broadcast %34 : vector<64x1xf32> to vector<64x256xf32>
      %36 = arith.addf %33, %35 : vector<64x256xf32>
      %37 = arith.truncf %36 : vector<64x256xf32> to vector<64x256xbf16>
      %c0_18 = arith.constant 0 : index
      %c0_19 = arith.constant 0 : index
      %38 = vector.load %arg7[%c0_18, %c0_19] : memref<64x256xbf16, #tpu.memory_space<vmem>>, vector<64x256xbf16>
      tpu.vector_store %arg7[%c0_18, %c0_19], %37 {strides = array<i32>} : memref<64x256xbf16, #tpu.memory_space<vmem>>, vector<64x256xbf16>,
      %cst_20 = arith.constant 0.000000e+00 : f32
      %39 = vector.broadcast %cst_20 : f32 to vector<32x256xf32>
      %c0_21 = arith.constant 0 : index
      %c0_22 = arith.constant 0 : index
      %40 = vector.load %arg8[%c0_21, %c0_22] : memref<32x256xf32, #tpu.memory_space<vmem>>, vector<32x256xf32>
      tpu.vector_store %arg8[%c0_21, %c0_22], %39 {strides = array<i32>} : memref<32x256xf32, #tpu.memory_space<vmem>>, vector<32x256xf32>,
    } else {
    }
    %c128_i32 = arith.constant 128 : i32
    %3 = arith.muli %arg1, %c128_i32 : i32
    %4 = tpu.assume_multiple %3, 128 : i32
    %c0 = arith.constant 0 : index
    %5 = arith.index_cast %4 : i32 to index
    %6 = vector.load %arg7[%c0, %5] : memref<64x256xbf16, #tpu.memory_space<vmem>>, vector<16x128xbf16>
    %c16 = arith.constant 16 : index
    %c0_1 = arith.constant 0 : index
    %7 = vector.load %arg7[%c16, %c0_1] : memref<64x256xbf16, #tpu.memory_space<vmem>>, vector<16x256xbf16>
    %c32 = arith.constant 32 : index
    %8 = arith.index_cast %4 : i32 to index
    %9 = vector.load %arg7[%c32, %8] : memref<64x256xbf16, #tpu.memory_space<vmem>>, vector<32x128xbf16>
    %cst = arith.constant dense<0.000000e+00> : vector<128x256xf32>
    %10 = tpu.matmul %6, %7, %cst {dimension_numbers = #tpu.dot_dimension_numbers<[0], [0], [1], [1], [0, 1, 1, 1], [], []>} : vector<16x128xbf16>, vector<16x256xbf16>, vector<128x256xf32> -> vector<128x256xf32>
    %cst_2 = arith.constant dense<0xFF800000> : vector<128xf32>
    %11 = vector.multi_reduction <maximumf>, %10, %cst_2 [1] : vector<128x256xf32> to vector<128xf32>
    %12 = vector.shape_cast %11 : vector<128xf32> to vector<128x1xf32>
    %13 = vector.broadcast %12 : vector<128x1xf32> to vector<128x256xf32>
    %14 = arith.subf %10, %13 : vector<128x256xf32>
    %15 = math.exp %14 : vector<128x256xf32>
    %cst_3 = arith.constant dense<0.000000e+00> : vector<128xf32>
    %16 = vector.multi_reduction <add>, %15, %cst_3 [1] : vector<128x256xf32> to vector<128xf32>
    %17 = vector.shape_cast %16 : vector<128xf32> to vector<128x1xf32>
    %18 = tpu.reciprocal %17 : vector<128x1xf32> -> vector<128x1xf32>
    %19 = vector.broadcast %18 : vector<128x1xf32> to vector<128x256xf32>
    %20 = arith.mulf %15, %19 : vector<128x256xf32>
    %21 = arith.truncf %20 : vector<128x256xf32> to vector<128x256xbf16>
    %c0_4 = arith.constant 0 : index
    %c0_5 = arith.constant 0 : index
    %22 = vector.load %arg8[%c0_4, %c0_5] : memref<32x256xf32, #tpu.memory_space<vmem>>, vector<32x256xf32>
    %cst_6 = arith.constant dense<0.000000e+00> : vector<32x256xf32>
    %23 = tpu.matmul %9, %21, %cst_6 {dimension_numbers = #tpu.dot_dimension_numbers<[1], [0], [0], [1], [0, 0, 1, 1], [], []>} : vector<32x128xbf16>, vector<128x256xbf16>, vector<32x256xf32> -> vector<32x256xf32>
    %24 = arith.addf %22, %23 : vector<32x256xf32>
    %c0_7 = arith.constant 0 : index
    %c0_8 = arith.constant 0 : index
    %25 = vector.load %arg8[%c0_7, %c0_8] : memref<32x256xf32, #tpu.memory_space<vmem>>, vector<32x256xf32>
    tpu.vector_store %arg8[%c0_7, %c0_8], %24 {strides = array<i32>} : memref<32x256xf32, #tpu.memory_space<vmem>>, vector<32x256xf32>,
    %c1_i32 = arith.constant 1 : i32
    %26 = arith.cmpi eq, %arg1, %c1_i32 : i32
    %27 = arith.extui %26 : i1 to i32
    %c0_i32_9 = arith.constant 0 : i32
    %28 = arith.cmpi ne, %27, %c0_i32_9 : i32
    scf.if %28 {
      %c0_10 = arith.constant 0 : index
      %c0_11 = arith.constant 0 : index
      %29 = memref.load %arg5[%c0_10, %c0_11] : memref<1x1xf32, #tpu.memory_space<smem>>
      %c0_12 = arith.constant 0 : index
      %c0_13 = arith.constant 0 : index
      %30 = vector.load %arg8[%c0_12, %c0_13] : memref<32x256xf32, #tpu.memory_space<vmem>>, vector<32x256xf32>
      %31 = vector.broadcast %29 : f32 to vector<32x256xf32>
      %32 = arith.mulf %31, %30 : vector<32x256xf32>
      %c0_14 = arith.constant 0 : index
      %c0_15 = arith.constant 0 : index
      %c0_16 = arith.constant 0 : index
      %33 = vector.load %arg2[%c0_14, %c0_15, %c0_16] : memref<1x32x256xf32, #tpu.memory_space<vmem>>, vector<1x32x256xf32>
      %34 = vector.shape_cast %33 : vector<1x32x256xf32> to vector<32x256xf32>
      %35 = arith.addf %32, %34 : vector<32x256xf32>
      %c0_17 = arith.constant 0 : index
      %c0_18 = arith.constant 0 : index
      %c0_19 = arith.constant 0 : index
      %36 = vector.load %arg6[%c0_17, %c0_18, %c0_19] : memref<1x32x256xf32, #tpu.memory_space<vmem>>, vector<1x32x256xf32>
      %37 = vector.shape_cast %36 : vector<1x32x256xf32> to vector<32x256xf32>
      %38 = vector.shape_cast %35 : vector<32x256xf32> to vector<1x32x256xf32>
      tpu.vector_store %arg6[%c0_17, %c0_18, %c0_19], %38 {strides = array<i32>} : memref<1x32x256xf32, #tpu.memory_space<vmem>>, vector<1x32x256xf32>,
    } else {
    }
    return
  }
  func.func @transform_0(%arg0: i32, %arg1: i32) -> (i32, i32, i32) {
    %c0_i32 = arith.constant 0 : i32
    %c0_i32_0 = arith.constant 0 : i32
    %c0_i32_1 = arith.constant 0 : i32
    return %arg0, %c0_i32, %c0_i32_0 : i32, i32, i32
  }
  func.func @transform_1(%arg0: i32, %arg1: i32) -> (i32, i32) {
    %c0_i32 = arith.constant 0 : i32
    %c0_i32_0 = arith.constant 0 : i32
    %c0_i32_1 = arith.constant 0 : i32
    return %c0_i32, %c0_i32_0 : i32, i32
  }
  func.func @transform_2(%arg0: i32, %arg1: i32) -> (i32, i32) {
    %c0_i32 = arith.constant 0 : i32
    %c0_i32_0 = arith.constant 0 : i32
    %c0_i32_1 = arith.constant 0 : i32
    return %c0_i32, %c0_i32_0 : i32, i32
  }
  func.func @transform_3(%arg0: i32, %arg1: i32) -> (i32, i32) {
    %c0_i32 = arith.constant 0 : i32
    %c0_i32_0 = arith.constant 0 : i32
    %c0_i32_1 = arith.constant 0 : i32
    return %c0_i32, %c0_i32_0 : i32, i32
  }
  func.func @transform_4(%arg0: i32, %arg1: i32) -> (i32, i32, i32) {
    %c0_i32 = arith.constant 0 : i32
    %c0_i32_0 = arith.constant 0 : i32
    %c0_i32_1 = arith.constant 0 : i32
    return %arg0, %c0_i32, %c0_i32_0 : i32, i32, i32
  }
}

</mosaic_0001>

<bundles_post_ra>
// kernel: tpu_custom_call.1
= control target key start
LH: loop header
LB: loop body
LE: loop exit
PB: predicated region body
PF: predicated region fallthrough
CT: control target
= control target key end

     0   :  { %s2055_s0 = inlined_call_operand.hbm [shape: f32[2,32,256], index: 0, kind: input, shape index: {}]   ;;  %s2056_s1 = inlined_call_operand.vmem [shape: bf16[64,32], index: 1, kind: input, shape index: {}]   ;;  %s2057_s2 = inlined_call_operand.vmem [shape: f32[64,1], index: 2, kind: input, shape index: {}]   ;;  %s2058_s3 = inlined_call_operand.<no memory space> [shape: f32[1,1], index: 3, kind: input, shape index: {}]   ;;  %s2059_s4 = inlined_call_operand.hbm [shape: f32[2,32,256], index: 4, kind: output, shape index: {}]  }
   0x1   :  { %9 = sst [smem:[#allocation4]] %s2058_s3 }
   0x2   :  { %10 = vsyncpa [#allocation6], 0 }
   0x3   :  { %12 = vsyncpa [#allocation6 + $0x1], 0 }
   0x4   :  { %13 = vsyncpa [#allocation7], 0 }
   0x5   :  { %15 = vsyncpa [#allocation7 + $0x1], 0  ;;  %s1564_s17 = smov 0   ;;  %s1566_s18 = smov 0  }
   0x6   :  { %s1568_s19 = smov 0   ;;  %s1570_s20 = smov 0  }
   0x7   :  { %s1572_s21 = smov 0   ;;  %s1574_s22 = smov 0  }
   0x8   :  { %s1576_s23 = smov 0   ;;  %s1578_s24 = smov 0  }
   0x9 LB: > { %s1146_s3 = sadd.s32 4294967295, %s1525_s24   ;;  %s1147_s25 = sadd.s32 4294967294, %s1525_s24   ;;  %s1525_s24 = sphi %s1578_s24, %s21_s24   ;;  %s1521_s23 = sphi %s1576_s23, %s2071_s23   ;;  %s1517_s22 = sphi %s1574_s22, %s2070_s22   ;;  %s1513_s21 = sphi %s1572_s21, %s2069_s21   ;;  %s1509_s20 = sphi %s1570_s20, %s2068_s20   ;;  %s1505_s19 = sphi %s1568_s19, %s2067_s19   ;;  %s1501_s18 = sphi %s1566_s18, %s2066_s18   ;;  %s1497_s17 = sphi %s1564_s17, %s2065_s17  }
   0xa   : > { %s30_s26 = sadd.s32 1, %s1517_s22  ;;  %s33_s27 = sadd.s32 1, %s1521_s23 }
   0xb   : > { %p31_p0 = scmp.ge.s32.totalorder %s30_s26, 2  ;;  %s40_s28 = sadd.s32 1, %s1505_s19 }
   0xc   : > { %p47_p1 = scmp.ne.s32.totalorder %s1505_s19, %s1501_s18  ;;  %p48_p2 = scmp.eq.s32.totalorder %s1525_s24, 0 }
   0xd   : > { %s2073_s26 = smov (%p31_p0, %s30_s26), 0  ;;  %s2075_s27 = smov (!%p31_p0, %s33_s27), %s1521_s23 }
   0xe   : > { %p1615_p3 = por %p48_p2, %p47_p1  ;;  %p53_p4 = scmp.ne.s32.totalorder %s1501_s18, %s1497_s17 }
   0xf   : > { %p35_p5 = scmp.ge.s32.totalorder %s2075_s27, 2  ;;  %p54_p6 = scmp.eq.s32.totalorder %s1146_s3, 0 }
  0x10   : > { %p140_p7 = scmp.eq.s32.totalorder %s1146_s3, 3  ;;  %p146_p8 = scmp.eq.s32.totalorder %s1147_s25, 3 }
  0x11   : > { %s2077_s27 = smov (%p35_p5, %s2075_s27), 0  ;;  %p1623_p9 = por %p54_p6, %p53_p4 }
  0x12   : > { %p1627_p10 = por %p140_p7, %p47_p1  ;;  %s37_s6 = ssub.s32 %s1521_s23, %s2077_s27 }
  0x13   : > { %p1633_p11 = por %p146_p8, %p53_p4  ;;  %p38_p12 = scmp.eq.s32.totalorder %s37_s6, 0 }
  0x14   : > { %p1220_p13 = scmp.lt.s32.totalorder %s1525_s24, 4  ;;  %s175_s8 = sand.u32 1, %s1505_s19  }
  0x15   : > { %s1640_s9 = scalar_select %p38_p12, %s1505_s19, %s40_s28  }
  0x16   : > { %s1150_s10 = sshll.u32 %s175_s8, 6  ;;  %s1194_s11 = sshll.u32 %s1521_s23, 10 }
  0x17   : > { %s185_s14 = scalar_lea.hbm %s2055_s0, %s1194_s11  ;;  %s179_s15 = scalar_lea.vmem [#allocation5], %s1150_s10 }
  0x18   : > { %s186_s16 = sshll.u32 %s179_s15, 4  ;;  %p1648_p0 = pnand %p1220_p13, %p1615_p3  ;;  %s187_s16 = int_to_ptr.vmem [resolvable:$true] %s186_s16 }
  0x19   : > { %p1153_p1 = scmp.ge.s32.totalorder %s1525_s24, 1  ;;  %s176_s25 = scalar_lea.sflag [#allocation6], %s175_s8 }
  0x1a   : > { %p1403_p2 = pneg %p1648_p0  ;;  %s1414_s28 = scalar_lea.vmem %s187_s16, 1024 }
  0x1b   : > { %p1415_p4 = scmp.ne.s32.totalorder %s187_s16, %s1414_s28  ;;  %s1527_s6 = smov [#allocation5]  }
  0x1c   : > { %s1419_s12 = sshll.u32 %s1527_s6, 4  ;;  %s1420_s12 = int_to_ptr.vmem [resolvable:$false] %s1419_s12 }
  0x1d   : > { %p1417_p5 = pnand %p1415_p4, %p1403_p2  ;;  %s1421_s10 = scalar_lea.vmem %s1420_s12, 2048 }
  0x1e   : > { %p1422_p7 = scmp.lt.s32.totalorder %s187_s16, %s1420_s12  ;;  %p1423_p8 = scmp.lt.s32.totalorder %s1421_s10, %s1414_s28 }
  0x1f   : > { %p1418_p6 = pneg %p1417_p5 }
  0x20   : > { %p1424_p12 = por %p1423_p8, %p1422_p7 }
  0x22   : > { %p1425_p3 = pnand %p1424_p12, %p1418_p6 }
  0x24   : > { %1428 = shalt.err (!%p1425_p3)
}
  0x25   : > { %s1528_s29 = smov 256   ;;  %s1529_s8 = smov 16  }
  0x26   : > { %1215 = dma.hbm_to_vmem [thread:$0]  (!%p1648_p0), %s185_s14, 1024, %s187_s16, %s176_s25, %s1528_s29, %s1528_s29, %s1529_s8  }
  0x27   : > { %p194_p13 = scmp.lt.s32.totalorder %s1525_s24, 5 }
  0x29   : > { %p195_p2 = pnand %p1153_p1, %p194_p13 }
  0x2a   : > { %s1661_s11 = sand.u32 (!%p195_p2), 1, %s1501_s18  }
  0x2b   : > { %198 = sbr.rel (%p195_p2) target bundleno = 1244 (0x4dc), region = 36  ;;  %s1154_s13 = sshll.u32 (!%p195_p2), %s1661_s11, 6 }
  0x2c   : > { %s201_s15 = scalar_lea.sflag (!%p195_p2), [#allocation6], %s1661_s11  ;;  %s1665_s28 = scalar_lea.vmem (!%p195_p2), [#allocation5], %s1154_s13 }
  0x30   : > { %1488 = dma.done.wait (%p1623_p9), %s201_s15, 1024  }
  0x31   : > { %1490 = vsyncadd (%p1623_p9), %s201_s15, 4294966272  ;;  %s1671_s14 = scalar_lea.vmem [#allocation8], %s1154_s13  ;;  %p1156_p0 = scmp.ne.s32.totalorder %s1509_s20, 0 }
  0x33   : > { %233 = sbr.rel (%p1156_p0) target bundleno = 279 (0x117), region = 44 }
  0x38   : > { %v239_v0 = vld [vmem:[%s1665_s28 + $0x28] sm:$0xff]  ;;  %v241_v1 = vld [vmem:[%s1665_s28 + $0x38] sm:$0xff]  ;;  %v238_v2 = vld [vmem:[%s1665_s28 + $0x20] sm:$0xff]  ;;  %v1530_v7 = vmov 0   ;;  %vm322_vm0 = vcmask 261120   ;;  %v1531_v25 = vmov 0.0  }
  0x39   : > { %v245_v3 = vpack.c.bf16 %v241_v1, %v239_v0  ;;  %v240_v4 = vld [vmem:[%s1665_s28 + $0x30] sm:$0xff]  ;;  %v235_v5 = vld [vmem:[%s1665_s28 + $0x8] sm:$0xff]  ;;  %v237_v6 = vld [vmem:[%s1665_s28 + $0x18] sm:$0xff]  ;;  %367 = vmatprep.mubr.bf16.mxu0 %v1530_v7  ;;  %387 = vmatprep.mubr.bf16.mxu1 %v1530_v7  ;;  %464 = vst [vmem:[#allocation3 + $0x30] sm:$0xff] %v1531_v25 }
  0x3a   : > { %v244_v8 = vpack.c.bf16 %v240_v4, %v238_v2  ;;  %v243_v9 = vpack.c.bf16 %v237_v6, %v235_v5  ;;  %v234_v10 = vld [vmem:[%s1665_s28] sm:$0xff]  ;;  %v236_v11 = vld [vmem:[%s1665_s28 + $0x10] sm:$0xff]  ;;  %1294 = vset.pattern.permute.xlu1 %v1530_v7  ;;  %1293 = vset.pattern.permute.xlu0 %v1530_v7  ;;  %v257_v17 = vld [vmem:[%s2057_s2 + $0x18] sm:$0xff]  ;;  %465 = vst [vmem:[#allocation3] sm:$0xff] %v1531_v25 }
  0x3b   : > { %347 = vmatprep.subr.bf16.mxu0 %v245_v3  ;;  %1204 = vmatprep.subr.bf16.mxu1 %v245_v3  ;;  %v242_v12 = vpack.c.bf16 %v236_v11, %v234_v10  ;;  %v256_v13 = vld [vmem:[%s2057_s2 + $0x10] sm:$0xff]  ;;  %v1295_v14 = vld [vmem:[%s2056_s1] sm:$0xff]   ;;  %v255_v18 = vld [vmem:[%s2057_s2 + $0x8] sm:$0xff]  ;;  %466 = vst [vmem:[#allocation3 + $0x18] sm:$0xff] %v1531_v25 }
  0x3c   : > { %348 = vmatpush1.bf16.msra.mxu0 %v244_v8  ;;  %1206 = vmatpush1.bf16.msra.mxu1 %v244_v8  ;;  %v1296_v15 = vld [vmem:[%s2056_s1 + $0x10] sm:$0xff]   ;;  %v254_v16 = vld [vmem:[%s2057_s2] sm:$0xff]  ;;  %v259_v19 = vld [vmem:[%s2057_s2 + $0x28] sm:$0xff]  ;;  %467 = vst [vmem:[#allocation3 + $0x10] sm:$0xff] %v1531_v25 }
  0x3d   : > { %349 = vmatprep.subr.bf16.mxu0 %v243_v9  ;;  %1205 = vmatprep.subr.bf16.mxu1 %v243_v9  ;;  %v258_v20 = vld [vmem:[%s2057_s2 + $0x20] sm:$0xff]  ;;  %v1297_v21 = vld [vmem:[%s2056_s1 + $0x8] sm:$0xff]   ;;  %v1298_v22 = vld [vmem:[%s2056_s1 + $0x18] sm:$0xff]   ;;  %468 = vst [vmem:[#allocation3 + $0x8] sm:$0xff] %v1531_v25 }
  0x3e   : > { %274 = vperm.xlu1 %1294, %v256_v13   ;;  %264 = vperm.xlu0 %1293, %v254_v16   ;;  %v261_v23 = vld [vmem:[%s2057_s2 + $0x38] sm:$0xff]  ;;  %v260_v24 = vld [vmem:[%s2057_s2 + $0x30] sm:$0xff]  ;;  %469 = vst [vmem:[#allocation3 + $0x20] sm:$0xff] %v1531_v25  ;;  %470 = vst [vmem:[#allocation3 + $0x28] sm:$0xff] %v1531_v25 }
  0x3f   : > { %471 = vst [vmem:[#allocation3 + $0x38] sm:$0xff] %v1531_v25 }
  0x40   : > { %350 = vmatpush1.bf16.msra.mxu0 %v242_v12  ;;  %1207 = vmatpush1.bf16.msra.mxu1 %v242_v12 }
  0x42   : > { %279 = vperm.xlu1 %1294, %v257_v17   ;;  %269 = vperm.xlu0 %1293, %v255_v18  }
  0x43   : > { %1161 = vmatmul.mubr.msk.bf16.vlgmr.msra.gmra.mxu0 %vm322_vm0, %v1295_v14  ;;  %1163 = vmatmul.mubr.msk.bf16.vlgmr.msra.gmra.mxu1 %vm322_vm0, %v1296_v15 }
  0x44   : > { %377 = vmatprep.mubr.bf16.mxu0 %v1530_v7  ;;  %397 = vmatprep.mubr.bf16.mxu1 %v1530_v7 }
  0x46   : > { %289 = vperm.xlu1 %1294, %v259_v19   ;;  %284 = vperm.xlu0 %1293, %v258_v20  }
  0x4a   : > { %299 = vperm.xlu1 %1294, %v261_v23   ;;  %294 = vperm.xlu0 %1293, %v260_v24  }
  0x4b   : > { %1162 = vmatmul.mubr.msk.bf16.gmra.mxu0 %vm322_vm0, %v1297_v21  ;;  %1164 = vmatmul.mubr.msk.bf16.gmra.mxu1 %vm322_vm0, %v1298_v22 }
  0xb9   : > { %v265_v26 = vpop.permute.xlu0 %264  ;;  %v275_v27 = vpop.permute.xlu1 %274 }
  0xbd   : > { %v270_v28 = vpop.permute.xlu0 %269  ;;  %v280_v29 = vpop.permute.xlu1 %279 }
  0xc1   : > { %v285_v32 = vpop.permute.xlu0 %284  ;;  %v290_v41 = vpop.permute.xlu1 %289 }
  0xc5   : > { %v295_v52 = vpop.permute.xlu0 %294  ;;  %v300_v63 = vpop.permute.xlu1 %299 }
 0x103   : > { %v369_v30 = vpop.f32.mrf.mxu0  ;;  %v389_v31 = vpop.f32.mrf.mxu1 }
 0x104   : > { %v370_v35 = vadd.f32 %v369_v30, %v265_v26  ;;  %v390_v36 = vadd.f32 %v389_v31, %v285_v32 }
 0x105   : > { %v371_v33 = vpop.f32.mrf.mxu0  ;;  %v391_v34 = vpop.f32.mrf.mxu1 }
 0x106   : > { %v372_v37 = vadd.f32 %v371_v33, %v265_v26  ;;  %v392_v38 = vadd.f32 %v391_v34, %v285_v32 }
 0x107   : > { %v373_v39 = vpop.f32.mrf.mxu0  ;;  %v393_v40 = vpop.f32.mrf.mxu1 }
 0x108   : > { %v1195_v42 = vpack.c.bf16 %v372_v37, %v370_v35  ;;  %v1199_v43 = vpack.c.bf16 %v392_v38, %v390_v36  ;;  %v374_v46 = vadd.f32 %v373_v39, %v270_v28  ;;  %v394_v47 = vadd.f32 %v393_v40, %v290_v41 }
 0x109   : > { %v375_v44 = vpop.f32.mrf.mxu0  ;;  %v395_v45 = vpop.f32.mrf.mxu1 }
 0x10a   : > { %456 = vst [vmem:[#allocation2] sm:$0xff] %v1195_v42  ;;  %460 = vst [vmem:[#allocation2 + $0x20] sm:$0xff] %v1199_v43  ;;  %v376_v48 = vadd.f32 %v375_v44, %v270_v28  ;;  %v396_v49 = vadd.f32 %v395_v45, %v290_v41 }
 0x10b   : > { %v379_v50 = vpop.f32.mrf.mxu0  ;;  %v399_v51 = vpop.f32.mrf.mxu1 }
 0x10c   : > { %v1196_v53 = vpack.c.bf16 %v376_v48, %v374_v46  ;;  %v1200_v54 = vpack.c.bf16 %v396_v49, %v394_v47  ;;  %v380_v57 = vadd.f32 %v379_v50, %v275_v27  ;;  %v400_v58 = vadd.f32 %v399_v51, %v295_v52 }
 0x10d   : > { %v381_v55 = vpop.f32.mrf.mxu0  ;;  %v401_v56 = vpop.f32.mrf.mxu1 }
 0x10e   : > { %457 = vst [vmem:[#allocation2 + $0x8] sm:$0xff] %v1196_v53  ;;  %461 = vst [vmem:[#allocation2 + $0x28] sm:$0xff] %v1200_v54  ;;  %v382_v59 = vadd.f32 %v381_v55, %v275_v27  ;;  %v402_v60 = vadd.f32 %v401_v56, %v295_v52 }
 0x10f   : > { %v383_v61 = vpop.f32.mrf.mxu0  ;;  %v403_v62 = vpop.f32.mrf.mxu1 }
 0x110   : > { %v1197_v0 = vpack.c.bf16 %v382_v59, %v380_v57  ;;  %v1201_v1 = vpack.c.bf16 %v402_v60, %v400_v58  ;;  %v384_v4 = vadd.f32 %v383_v61, %v280_v29  ;;  %v404_v5 = vadd.f32 %v403_v62, %v300_v63 }
 0x111   : > { %v385_v2 = vpop.f32.mrf.mxu0  ;;  %v405_v3 = vpop.f32.mrf.mxu1 }
 0x112   : > { %458 = vst [vmem:[#allocation2 + $0x10] sm:$0xff] %v1197_v0  ;;  %462 = vst [vmem:[#allocation2 + $0x30] sm:$0xff] %v1201_v1  ;;  %v386_v6 = vadd.f32 %v385_v2, %v280_v29  ;;  %v406_v7 = vadd.f32 %v405_v3, %v300_v63 }
 0x114   : > { %v1198_v8 = vpack.c.bf16 %v386_v6, %v384_v4  ;;  %v1202_v9 = vpack.c.bf16 %v406_v7, %v404_v5 }
 0x116   : > { %459 = vst [vmem:[#allocation2 + $0x18] sm:$0xff] %v1198_v8  ;;  %463 = vst [vmem:[#allocation2 + $0x38] sm:$0xff] %v1202_v9 }
 0x117 PF: > { %s1173_s3 = sshll.u32 %s1509_s20, 7  ;;  %v1532_v12 = vmov 0   ;;  %vm517_vm1 = vcmask 130048   ;;  %p1188_p9 = scmp.ne.s32.totalorder %s1509_s20, 1 }
 0x118   : > { %s473_s25 = sshra.s32 %s1173_s3, 7  ;;  %574 = vmatprep.mubr.bf16.mxu0 %v1532_v12  ;;  %963 = vmatprep.mubr.bf16.mxu1 %v1532_v12  ;;  %s1004_s10 = sld [smem:[#allocation4]] (!%p1188_p9) }
 0x119   : > { %s1174_s6 = sshll.u32 %s473_s25, 2 }
 0x11a   : > { %s1725_s12 = scalar_lea.vmem [#allocation2], %s1174_s6 }
 0x11d   : > { %v1300_v10 = vld [vmem:[#allocation2 + $0x14] ss:$8 sps:$4 sm:$0xff]   ;;  %v1302_v11 = vld [vmem:[#allocation2 + $0x10] ss:$8 sps:$4 sm:$0xff]   ;;  %v1299_v13 = vld [vmem:[%s1725_s12] ss:$8 sps:$4 sm:$0xff]  }
 0x11e   : > { %556 = vmatprep.subr.bf16.mxu0 %v1300_v10  ;;  %491 = vxpose.xlu0.c.b16.start.end [1/1] (short) %v1299_v13, 128 }
 0x11f   : > { %557 = vmatpush1.bf16.msra.mxu0 %v1302_v11 }
 0x180   : > { %v499_v14 = vpop.trf.xlu0 }
 0x181   : > { %1178 = vmatmul.mubr.msk.bf16.vlgmr.msra.gmra.mxu0 %vm517_vm1, %v499_v14 }
 0x182   : > { %584 = vmatprep.mubr.bf16.mxu0 %v1532_v12 }
 0x184   : > { %v500_v15 = vpop.trf.xlu0 }
 0x188   : > { %v501_v16 = vpop.trf.xlu0 }
 0x189   : > { %1179 = vmatmul.mubr.msk.bf16.gmra.mxu0 %vm517_vm1, %v500_v15 }
 0x18a   : > { %594 = vmatprep.mubr.bf16.mxu0 %v1532_v12 }
 0x18c   : > { %v502_v17 = vpop.trf.xlu0 }
 0x190   : > { %v503_v18 = vpop.trf.xlu0 }
 0x191   : > { %1180 = vmatmul.mubr.msk.bf16.gmra.mxu0 %vm517_vm1, %v501_v16 }
 0x192   : > { %604 = vmatprep.mubr.bf16.mxu0 %v1532_v12 }
 0x194   : > { %v504_v19 = vpop.trf.xlu0 }
 0x198   : > { %v505_v20 = vpop.trf.xlu0 }
 0x199   : > { %1181 = vmatmul.mubr.msk.bf16.gmra.mxu0 %vm517_vm1, %v502_v17 }
 0x19a   : > { %614 = vmatprep.mubr.bf16.mxu0 %v1532_v12 }
 0x19c   : > { %v506_v21 = vpop.trf.xlu0 }
 0x1a1   : > { %1182 = vmatmul.mubr.msk.bf16.gmra.mxu0 %vm517_vm1, %v503_v18 }
 0x1a2   : > { %624 = vmatprep.mubr.bf16.mxu0 %v1532_v12 }
 0x1a9   : > { %1183 = vmatmul.mubr.msk.bf16.gmra.mxu0 %vm517_vm1, %v504_v19 }
 0x1aa   : > { %634 = vmatprep.mubr.bf16.mxu0 %v1532_v12 }
 0x1b1   : > { %1184 = vmatmul.mubr.msk.bf16.gmra.mxu0 %vm517_vm1, %v505_v20 }
 0x1b2   : > { %644 = vmatprep.mubr.bf16.mxu0 %v1532_v12 }
 0x1b9   : > { %1185 = vmatmul.mubr.msk.bf16.gmra.mxu0 %vm517_vm1, %v506_v21 }
 0x241   : > { %v1743_v22 = vpop.f32.mrf.mxu0 }
 0x243   : > { %v1745_v23 = vpop.f32.mrf.mxu0 }
 0x244   : > { %v655_v5 = vmax.f32 %v1743_v22, %v1745_v23 }
 0x245   : > { %v1747_v24 = vpop.f32.mrf.mxu0 }
 0x247   : > { %v1749_v25 = vpop.f32.mrf.mxu0 }
 0x248   : > { %v658_v60 = vmax.f32 %v1747_v24, %v1749_v25 }
 0x249   : > { %v1751_v26 = vpop.f32.mrf.mxu0 }
 0x24b   : > { %v1753_v27 = vpop.f32.mrf.mxu0 }
 0x24c   : > { %v661_v4 = vmax.f32 %v1751_v26, %v1753_v27 }
 0x24d   : > { %v1755_v28 = vpop.f32.mrf.mxu0 }
 0x24f   : > { %v1757_v29 = vpop.f32.mrf.mxu0 }
 0x250   : > { %v664_v57 = vmax.f32 %v1755_v28, %v1757_v29 }
 0x251   : > { %v1759_v30 = vpop.f32.mrf.mxu0 }
 0x253   : > { %v1761_v31 = vpop.f32.mrf.mxu0 }
 0x254   : > { %v667_v2 = vmax.f32 %v1759_v30, %v1761_v31 }
 0x255   : > { %v1763_v32 = vpop.f32.mrf.mxu0 }
 0x257   : > { %v1765_v33 = vpop.f32.mrf.mxu0 }
 0x258   : > { %v670_v3 = vmax.f32 %v1763_v32, %v1765_v33 }
 0x259   : > { %v1767_v34 = vpop.f32.mrf.mxu0 }
 0x25b   : > { %v1769_v35 = vpop.f32.mrf.mxu0 }
 0x25c   : > { %v673_v0 = vmax.f32 %v1767_v34, %v1769_v35 }
 0x25d   : > { %v1771_v36 = vpop.f32.mrf.mxu0 }
 0x25f   : > { %v1773_v37 = vpop.f32.mrf.mxu0 }
 0x260   : > { %v676_v1 = vmax.f32 %v1771_v36, %v1773_v37 }
 0x261   : > { %v1775_v38 = vpop.f32.mrf.mxu0 }
 0x263   : > { %v1777_v39 = vpop.f32.mrf.mxu0 }
 0x264   : > { %v679_v59 = vmax.f32 %v1775_v38, %v1777_v39 }
 0x265   : > { %v1779_v40 = vpop.f32.mrf.mxu0 }
 0x267   : > { %v1781_v41 = vpop.f32.mrf.mxu0 }
 0x268   : > { %v682_v63 = vmax.f32 %v1779_v40, %v1781_v41 }
 0x269   : > { %v1783_v42 = vpop.f32.mrf.mxu0 }
 0x26b   : > { %v1785_v43 = vpop.f32.mrf.mxu0 }
 0x26c   : > { %v685_v54 = vmax.f32 %v1783_v42, %v1785_v43 }
 0x26d   : > { %v1787_v44 = vpop.f32.mrf.mxu0 }
 0x26f   : > { %v1789_v45 = vpop.f32.mrf.mxu0 }
 0x270   : > { %v688_v56 = vmax.f32 %v1787_v44, %v1789_v45 }
 0x271   : > { %v636_v46 = vpop.f32.mrf.mxu0 }
 0x273   : > { %v638_v47 = vpop.f32.mrf.mxu0 }
 0x274   : > { %v691_v48 = vmax.f32 %v636_v46, %v638_v47 }
 0x275   : > { %v1791_v49 = vpop.f32.mrf.mxu0 }
 0x276   : > { %692 = vmax.xlane.f32.xlu1 %v691_v48 }
 0x277   : > { %v1793_v50 = vpop.f32.mrf.mxu0 }
 0x278   : > { %v694_v51 = vmax.f32 %v1791_v49, %v1793_v50 }
 0x279   : > { %v646_v52 = vpop.f32.mrf.mxu0 }
 0x27a   : > { %695 = vmax.xlane.f32.xlu1 %v694_v51 }
 0x27b   : > { %v648_v53 = vpop.f32.mrf.mxu0 }
 0x27c   : > { %v697_v55 = vmax.f32 %v646_v52, %v648_v53 }
 0x27d   : > { %v650_v58 = vpop.f32.mrf.mxu0 }
 0x27e   : > { %686 = vmax.xlane.f32.xlu1 %v685_v54  ;;  %698 = vmax.xlane.f32.xlu0 %v697_v55 }
 0x27f   : > { %v652_v61 = vpop.f32.mrf.mxu0 }
 0x280   : > { %v700_v62 = vmax.f32 %v650_v58, %v652_v61 }
 0x282   : > { %689 = vmax.xlane.f32.xlu1 %v688_v56  ;;  %665 = vmax.xlane.f32.xlu0 %v664_v57 }
 0x286   : > { %680 = vmax.xlane.f32.xlu1 %v679_v59  ;;  %659 = vmax.xlane.f32.xlu0 %v658_v60 }
 0x28a   : > { %701 = vmax.xlane.f32.xlu1 %v700_v62 }
 0x28e   : > { %683 = vmax.xlane.f32.xlu1 %v682_v63 }
 0x292   : > { %674 = vmax.xlane.f32.xlu1 %v673_v0 }
 0x296   : > { %677 = vmax.xlane.f32.xlu1 %v676_v1 }
 0x29a   : > { %668 = vmax.xlane.f32.xlu1 %v667_v2 }
 0x29e   : > { %671 = vmax.xlane.f32.xlu1 %v670_v3 }
 0x2a2   : > { %662 = vmax.xlane.f32.xlu1 %v661_v4 }
 0x2a6   : > { %656 = vmax.xlane.f32.xlu1 %v655_v5 }
 0x2ff   : > { %v693_v6 = vpop.xlane.xlu1 %692 }
 0x300   : > { %v727_v10 = vsub.f32 %v636_v46, %v693_v6  ;;  %v728_v13 = vsub.f32 %v638_v47, %v693_v6 }
 0x302   : > { %v783_v18 = vmul.f32 1.442695, %v727_v10  ;;  %v785_v20 = vmul.f32 1.442695, %v728_v13 }
 0x303   : > { %v696_v7 = vpop.xlane.xlu1 %695 }
 0x304   : > { %v729_v47 = vsub.f32 %v1791_v49, %v696_v7  ;;  %v730_v55 = vsub.f32 %v1793_v50, %v696_v7 }
 0x306   : > { %v787_v59 = vmul.f32 1.442695, %v729_v47 }
 0x307   : > { %v687_v8 = vpop.xlane.xlu1 %686  ;;  %v699_v9 = vpop.xlane.xlu0 %698 }
 0x308   : > { %v731_v11 = vsub.f32 %v646_v52, %v699_v9  ;;  %v732_v14 = vsub.f32 %v648_v53, %v699_v9  ;;  %v723_v19 = vsub.f32 %v1783_v42, %v687_v8  ;;  %v724_v21 = vsub.f32 %v1785_v43, %v687_v8 }
 0x30a   : > { %v791_v15 = vmul.f32 1.442695, %v731_v11  ;;  %v793_v16 = vmul.f32 1.442695, %v732_v14  ;;  %v775_v51 = vmul.f32 1.442695, %v723_v19 }
 0x30b   : > { %v690_v17 = vpop.xlane.xlu1 %689  ;;  %v777_v52 = vmul.f32 1.442695, %v724_v21  ;;  %v666_v11 = vpop.xlane.xlu0 %665 }
 0x30c   : > { %1305 = vpow2.f32 %v791_v15  ;;  %v725_v60 = vsub.f32 %v1787_v44, %v690_v17  ;;  %v726_v63 = vsub.f32 %v1789_v45, %v690_v17 }
 0x30d   : > { %1307 = vpow2.f32 %v793_v16 }
 0x30e   : > { %1309 = vpow2.f32 %v783_v18  ;;  %v779_v50 = vmul.f32 1.442695, %v725_v60 }
 0x30f   : > { %v681_v48 = vpop.xlane.xlu1 %680  ;;  %1311 = vpow2.f32 %v785_v20 }
 0x310   : > { %v719_v54 = vsub.f32 %v1775_v38, %v681_v48  ;;  %v720_v46 = vsub.f32 %v1777_v39, %v681_v48  ;;  %1313 = vpow2.f32 %v775_v51  ;;  %v789_v39 = vmul.f32 1.442695, %v730_v55 }
 0x311   : > { %1315 = vpow2.f32 %v777_v52  ;;  %v709_v51 = vsub.f32 %v1755_v28, %v666_v11  ;;  %v710_v52 = vsub.f32 %v1757_v29, %v666_v11 }
 0x312   : > { %v767_v53 = vmul.f32 1.442695, %v719_v54  ;;  %v769_v42 = vmul.f32 1.442695, %v720_v46 }
 0x313   : > { %v702_v56 = vpop.xlane.xlu1 %701  ;;  %v747_v29 = vmul.f32 1.442695, %v709_v51 }
 0x314   : > { %v733_v43 = vsub.f32 %v650_v58, %v702_v56  ;;  %v734_v57 = vsub.f32 %v652_v61, %v702_v56  ;;  %1317 = vpow2.f32 %v767_v53  ;;  %v781_v61 = vmul.f32 1.442695, %v726_v63  ;;  %v660_v53 = vpop.xlane.xlu0 %659 }
 0x315   : > { %1319 = vpow2.f32 %v769_v42 }
 0x316   : > { %v795_v38 = vmul.f32 1.442695, %v733_v43  ;;  %v797_v62 = vmul.f32 1.442695, %v734_v57  ;;  %v705_v43 = vsub.f32 %v1747_v24, %v660_v53 }
 0x317   : > { %v684_v49 = vpop.xlane.xlu1 %683 }
 0x318   : > { %1321 = vpow2.f32 %v795_v38  ;;  %v721_v0 = vsub.f32 %v1779_v40, %v684_v49  ;;  %v722_v44 = vsub.f32 %v1781_v41, %v684_v49  ;;  %v749_v38 = vmul.f32 1.442695, %v710_v52 }
 0x319   : > { %1323 = vpow2.f32 %v797_v62  ;;  %v1830_v58 = vpop.eup %1305  ;;  %v706_v62 = vsub.f32 %v1749_v25, %v660_v53  ;;  %v739_v25 = vmul.f32 1.442695, %v705_v43 }
 0x31a   : > { %1325 = vpow2.f32 %v787_v59  ;;  %v1833_v2 = vpop.eup %1307  ;;  %v771_v40 = vmul.f32 1.442695, %v721_v0  ;;  %v773_v41 = vmul.f32 1.442695, %v722_v44 }
 0x31b   : > { %1327 = vpow2.f32 %v789_v39  ;;  %v675_v1 = vpop.xlane.xlu1 %674  ;;  %v1837_v4 = vpop.eup %1309  ;;  %v841_v5 = vadd.f32 %v1833_v2, %v1830_v58 }
 0x31c   : > { %v715_v3 = vsub.f32 %v1767_v34, %v675_v1  ;;  %v716_v45 = vsub.f32 %v1769_v35, %v675_v1  ;;  %v1841_v6 = vpop.eup %1311  ;;  %1329 = vpow2.f32 %v779_v50  ;;  %v741_v1 = vmul.f32 1.442695, %v706_v62 }
 0x31d   : > { %1331 = vpow2.f32 %v781_v61  ;;  %842 = vadd.xlane.f32.xlu1 %v841_v5  ;;  %v1845_v10 = vpop.eup %1313  ;;  %v835_v13 = vadd.f32 %v1841_v6, %v1837_v4 }
 0x31e   : > { %v759_v7 = vmul.f32 1.442695, %v715_v3  ;;  %v761_v8 = vmul.f32 1.442695, %v716_v45  ;;  %v1849_v14 = vpop.eup %1315 }
 0x31f   : > { %v678_v9 = vpop.xlane.xlu1 %677  ;;  %v829_v21 = vadd.f32 %v1849_v14, %v1845_v10 }
 0x320   : > { %1333 = vpow2.f32 %v759_v7  ;;  %v717_v34 = vsub.f32 %v1771_v36, %v678_v9  ;;  %v718_v35 = vsub.f32 %v1773_v37, %v678_v9 }
 0x321   : > { %1335 = vpow2.f32 %v761_v8  ;;  %v1851_v16 = vpop.eup %1317  ;;  %836 = vadd.xlane.f32.xlu1 %v835_v13 }
 0x322   : > { %1337 = vpow2.f32 %v771_v40  ;;  %v763_v15 = vmul.f32 1.442695, %v717_v34  ;;  %v765_v17 = vmul.f32 1.442695, %v718_v35  ;;  %v1853_v36 = vpop.eup %1319 }
 0x323   : > { %1339 = vpow2.f32 %v773_v41  ;;  %v669_v18 = vpop.xlane.xlu1 %668  ;;  %v823_v56 = vadd.f32 %v1853_v36, %v1851_v16 }
 0x324   : > { %v711_v37 = vsub.f32 %v1759_v30, %v669_v18  ;;  %v712_v19 = vsub.f32 %v1761_v31, %v669_v18  ;;  %1341 = vpow2.f32 %v763_v15 }
 0x325   : > { %v1857_v20 = vpop.eup %1321  ;;  %1343 = vpow2.f32 %v765_v17  ;;  %830 = vadd.xlane.f32.xlu1 %v829_v21 }
 0x326   : > { %v1861_v48 = vpop.eup %1323  ;;  %v751_v54 = vmul.f32 1.442695, %v711_v37  ;;  %v753_v46 = vmul.f32 1.442695, %v712_v19 }
 0x327   : > { %v1864_v47 = vpop.eup %1325  ;;  %v672_v30 = vpop.xlane.xlu1 %671  ;;  %v844_v31 = vadd.f32 %v1861_v48, %v1857_v20 }
 0x328   : > { %v1869_v55 = vpop.eup %1327  ;;  %1345 = vpow2.f32 %v751_v54  ;;  %v713_v42 = vsub.f32 %v1763_v32, %v672_v30  ;;  %v714_v28 = vsub.f32 %v1765_v33, %v672_v30 }
 0x329   : > { %1347 = vpow2.f32 %v753_v46  ;;  %845 = vadd.xlane.f32.xlu0 %v844_v31  ;;  %v1876_v60 = vpop.eup %1329  ;;  %824 = vadd.xlane.f32.xlu1 %v823_v56  ;;  %v838_v32 = vadd.f32 %v1869_v55, %v1864_v47 }
 0x32a   : > { %v755_v57 = vmul.f32 1.442695, %v713_v42  ;;  %v757_v59 = vmul.f32 1.442695, %v714_v28  ;;  %v1881_v33 = vpop.eup %1331 }
 0x32b   : > { %v663_v39 = vpop.xlane.xlu1 %662 }
 0x32c   : > { %1349 = vpow2.f32 %v755_v57  ;;  %v707_v63 = vsub.f32 %v1751_v26, %v663_v39  ;;  %v708_v49 = vsub.f32 %v1753_v27, %v663_v39  ;;  %v832_v26 = vadd.f32 %v1881_v33, %v1876_v60 }
 0x32d   : > { %v1885_v24 = vpop.eup %1333  ;;  %1351 = vpow2.f32 %v757_v59  ;;  %839 = vadd.xlane.f32.xlu0 %v838_v32 }
 0x32e   : > { %v1887_v50 = vpop.eup %1335  ;;  %1353 = vpow2.f32 %v747_v29  ;;  %v743_v0 = vmul.f32 1.442695, %v707_v63  ;;  %v745_v61 = vmul.f32 1.442695, %v708_v49 }
 0x32f   : > { %v1889_v44 = vpop.eup %1337  ;;  %1355 = vpow2.f32 %v749_v38  ;;  %v657_v3 = vpop.xlane.xlu1 %656  ;;  %v817_v27 = vadd.f32 %v1887_v50, %v1885_v24 }
 0x330   : > { %v1895_v45 = vpop.eup %1339  ;;  %1357 = vpow2.f32 %v743_v0  ;;  %v703_v5 = vsub.f32 %v1743_v22, %v657_v3  ;;  %v704_v40 = vsub.f32 %v1745_v23, %v657_v3 }
 0x331   : > { %1359 = vpow2.f32 %v745_v61  ;;  %833 = vadd.xlane.f32.xlu0 %v832_v26  ;;  %818 = vadd.xlane.f32.xlu1 %v817_v27  ;;  %v1899_v41 = vpop.eup %1341  ;;  %v826_v9 = vadd.f32 %v1895_v45, %v1889_v44 }
 0x332   : > { %1361 = vpow2.f32 %v739_v25  ;;  %v735_v7 = vmul.f32 1.442695, %v703_v5  ;;  %v737_v8 = vmul.f32 1.442695, %v704_v40  ;;  %v1903_v34 = vpop.eup %1343 }
 0x333   : > { %1363 = vpow2.f32 %v741_v1  ;;  %v820_v23 = vadd.f32 %v1903_v34, %v1899_v41 }
 0x334   : > { %1365 = vpow2.f32 %v735_v7 }
 0x335   : > { %v1905_v35 = vpop.eup %1345  ;;  %1367 = vpow2.f32 %v737_v8  ;;  %827 = vadd.xlane.f32.xlu0 %v826_v9 }
 0x336   : > { %v1907_v22 = vpop.eup %1347 }
 0x337   : > { %v811_v11 = vadd.f32 %v1907_v22, %v1905_v35 }
 0x339   : > { %v1913_v13 = vpop.eup %1349  ;;  %821 = vadd.xlane.f32.xlu0 %v820_v23  ;;  %812 = vadd.xlane.f32.xlu1 %v811_v11 }
 0x33a   : > { %v1915_v15 = vpop.eup %1351 }
 0x33b   : > { %v1917_v17 = vpop.eup %1353  ;;  %v814_v18 = vadd.f32 %v1915_v15, %v1913_v13 }
 0x33c   : > { %v1921_v37 = vpop.eup %1355 }
 0x33d   : > { %v1923_v19 = vpop.eup %1357  ;;  %815 = vadd.xlane.f32.xlu0 %v814_v18  ;;  %v808_v54 = vadd.f32 %v1921_v37, %v1917_v17 }
 0x33e   : > { %v1925_v21 = vpop.eup %1359 }
 0x33f   : > { %v1927_v51 = vpop.eup %1361  ;;  %v805_v46 = vadd.f32 %v1925_v21, %v1923_v19 }
 0x340   : > { %v1933_v52 = vpop.eup %1363 }
 0x341   : > { %v1935_v53 = vpop.eup %1365  ;;  %809 = vadd.xlane.f32.xlu0 %v808_v54  ;;  %806 = vadd.xlane.f32.xlu1 %v805_v46  ;;  %v802_v31 = vadd.f32 %v1933_v52, %v1927_v51 }
 0x342   : > { %v1937_v30 = vpop.eup %1367 }
 0x343   : > { %v799_v42 = vadd.f32 %v1937_v30, %v1935_v53 }
 0x345   : > { %803 = vadd.xlane.f32.xlu0 %v802_v31  ;;  %800 = vadd.xlane.f32.xlu1 %v799_v42 }
 0x3a6   : > { %v843_v28 = vpop.xlane.xlu1 %842 }
 0x3a7   : > { %1369 = vrcp.f32 %v843_v28 }
 0x3aa   : > { %v837_v56 = vpop.xlane.xlu1 %836 }
 0x3ae   : > { %v831_v43 = vpop.xlane.xlu1 %830 }
 0x3b2   : > { %v846_v29 = vpop.xlane.xlu0 %845  ;;  %v825_v59 = vpop.xlane.xlu1 %824 }
 0x3b3   : > { %1371 = vrcp.f32 %v846_v29 }
 0x3b4   : > { %1373 = vrcp.f32 %v837_v56  ;;  %v1370_v62 = vpop.eup %1369 }
 0x3b5   : > { %v892_v49 = vmul.f32 %v1370_v62, %v1833_v2  ;;  %v891_v61 = vmul.f32 %v1370_v62, %v1830_v58 }
 0x3b6   : > { %v840_v57 = vpop.xlane.xlu0 %839 }
 0x3b7   : > { %1375 = vrcp.f32 %v840_v57 }
 0x3b8   : > { %1377 = vrcp.f32 %v831_v43 }
 0x3ba   : > { %v834_v38 = vpop.xlane.xlu0 %833  ;;  %v819_v39 = vpop.xlane.xlu1 %818 }
 0x3bb   : > { %1379 = vrcp.f32 %v834_v38 }
 0x3bc   : > { %1381 = vrcp.f32 %v825_v59 }
 0x3be   : > { %v828_v32 = vpop.xlane.xlu0 %827 }
 0x3bf   : > { %1383 = vrcp.f32 %v828_v32 }
 0x3c0   : > { %v1372_v63 = vpop.eup %1371  ;;  %1385 = vrcp.f32 %v819_v39 }
 0x3c1   : > { %v1374_v25 = vpop.eup %1373  ;;  %v894_v0 = vmul.f32 %v1372_v63, %v1861_v48  ;;  %v893_v1 = vmul.f32 %v1372_v63, %v1857_v20 }
 0x3c2   : > { %v822_v3 = vpop.xlane.xlu0 %821  ;;  %v813_v26 = vpop.xlane.xlu1 %812  ;;  %v888_v7 = vmul.f32 %v1374_v25, %v1841_v6  ;;  %v887_v8 = vmul.f32 %v1374_v25, %v1837_v4 }
 0x3c3   : > { %1387 = vrcp.f32 %v822_v3  ;;  %v910_v27 = vpack.c.bf16 %v894_v0, %v892_v49  ;;  %v909_v5 = vpack.c.bf16 %v893_v1, %v891_v61 }
 0x3c4   : > { %v1376_v40 = vpop.eup %1375  ;;  %1389 = vrcp.f32 %v813_v26 }
 0x3c5   : > { %931 = vmatprep.subr.bf16.mxu1 %v910_v27  ;;  %v890_v2 = vmul.f32 %v1376_v40, %v1869_v55  ;;  %v889_v48 = vmul.f32 %v1376_v40, %v1864_v47  ;;  %v1378_v9 = vpop.eup %1377 }
 0x3c6   : > { %v816_v58 = vpop.xlane.xlu0 %815  ;;  %932 = vmatpush1.bf16.msra.mxu1 %v909_v5  ;;  %v884_v18 = vmul.f32 %v1378_v9, %v1849_v14  ;;  %v883_v54 = vmul.f32 %v1378_v9, %v1845_v10 }
 0x3c7   : > { %1391 = vrcp.f32 %v816_v58  ;;  %v908_v20 = vpack.c.bf16 %v890_v2, %v888_v7  ;;  %v907_v23 = vpack.c.bf16 %v889_v48, %v887_v8  ;;  %v911_v8 = vld [vmem:[#allocation3 + $0x30] sm:$0xff]  ;;  %v912_v48 = vld [vmem:[#allocation3] sm:$0xff]  ;;  %v913_v58 = vld [vmem:[#allocation3 + $0x18] sm:$0xff] }
 0x3c8   : > { %v1380_v11 = vpop.eup %1379 }
 0x3c9   : > { %933 = vmatprep.subr.bf16.mxu1 %v908_v20  ;;  %v886_v6 = vmul.f32 %v1380_v11, %v1881_v33  ;;  %v885_v55 = vmul.f32 %v1380_v11, %v1876_v60  ;;  %v1382_v46 = vpop.eup %1381  ;;  %v914_v20 = vld [vmem:[#allocation3 + $0x10] sm:$0xff] }
 0x3ca   : > { %v810_v4 = vpop.xlane.xlu0 %809  ;;  %934 = vmatpush1.bf16.msra.mxu1 %v907_v23  ;;  %v807_v47 = vpop.xlane.xlu1 %806  ;;  %v880_v56 = vmul.f32 %v1382_v46, %v1853_v36  ;;  %v879_v33 = vmul.f32 %v1382_v46, %v1851_v16 }
 0x3cb   : > { %1393 = vrcp.f32 %v810_v4  ;;  %v906_v31 = vpack.c.bf16 %v886_v6, %v884_v18  ;;  %v905_v42 = vpack.c.bf16 %v885_v55, %v883_v54  ;;  %v915_v18 = vld [vmem:[#allocation3 + $0x8] sm:$0xff] }
 0x3cc   : > { %v1384_v28 = vpop.eup %1383  ;;  %1395 = vrcp.f32 %v807_v47  ;;  %v917_v4 = vld [vmem:[#allocation3 + $0x28] sm:$0xff] }
 0x3cd   : > { %935 = vmatprep.subr.bf16.mxu1 %v906_v31  ;;  %v882_v14 = vmul.f32 %v1384_v28, %v1895_v45  ;;  %v881_v10 = vmul.f32 %v1384_v28, %v1889_v44  ;;  %v1386_v29 = vpop.eup %1385 }
 0x3ce   : > { %v804_v60 = vpop.xlane.xlu0 %803  ;;  %936 = vmatpush1.bf16.msra.mxu1 %v905_v42  ;;  %v801_v43 = vpop.xlane.xlu1 %800  ;;  %v876_v62 = vmul.f32 %v1386_v29, %v1887_v50  ;;  %v875_v45 = vmul.f32 %v1386_v29, %v1885_v24  ;;  %v918_v42 = vld [vmem:[#allocation3 + $0x38] sm:$0xff] }
 0x3cf   : > { %1397 = vrcp.f32 %v804_v60  ;;  %v904_v57 = vpack.c.bf16 %v882_v14, %v880_v56  ;;  %v903_v59 = vpack.c.bf16 %v881_v10, %v879_v33 }
 0x3d0   : > { %v1388_v38 = vpop.eup %1387  ;;  %1399 = vrcp.f32 %v801_v43 }
 0x3d1   : > { %937 = vmatprep.subr.bf16.mxu1 %v904_v57  ;;  %v878_v36 = vmul.f32 %v1388_v38, %v1903_v34  ;;  %v877_v16 = vmul.f32 %v1388_v38, %v1899_v41  ;;  %v1390_v39 = vpop.eup %1389 }
 0x3d2   : > { %938 = vmatpush1.bf16.msra.mxu1 %v903_v59  ;;  %v872_v49 = vmul.f32 %v1390_v39, %v1907_v22  ;;  %v871_v0 = vmul.f32 %v1390_v39, %v1905_v35 }
 0x3d3   : > { %v902_v44 = vpack.c.bf16 %v878_v36, %v876_v62  ;;  %v901_v32 = vpack.c.bf16 %v877_v16, %v875_v45 }
 0x3d4   : > { %v1392_v63 = vpop.eup %1391 }
 0x3d5   : > { %939 = vmatprep.subr.bf16.mxu1 %v902_v44  ;;  %v874_v25 = vmul.f32 %v1392_v63, %v1915_v15  ;;  %v873_v50 = vmul.f32 %v1392_v63, %v1913_v13 }
 0x3d6   : > { %940 = vmatpush1.bf16.msra.mxu1 %v901_v32 }
 0x3d7   : > { %v900_v34 = vpack.c.bf16 %v874_v25, %v872_v49  ;;  %v899_v61 = vpack.c.bf16 %v873_v50, %v871_v0 }
 0x3d8   : > { %v1394_v24 = vpop.eup %1393 }
 0x3d9   : > { %v1396_v1 = vpop.eup %1395  ;;  %941 = vmatprep.subr.bf16.mxu1 %v900_v34  ;;  %v870_v41 = vmul.f32 %v1394_v24, %v1921_v37  ;;  %v869_v3 = vmul.f32 %v1394_v24, %v1917_v17 }
 0x3da   : > { %942 = vmatpush1.bf16.msra.mxu1 %v899_v61  ;;  %v868_v22 = vmul.f32 %v1396_v1, %v1925_v21  ;;  %v867_v15 = vmul.f32 %v1396_v1, %v1923_v19  ;;  %v1303_v21 = vld [vmem:[%s1725_s12 + $0x20] ss:$8 sps:$4 sm:$0xff]   ;;  %v1304_v19 = vld [vmem:[%s1725_s12 + $0x30] ss:$8 sps:$4 sm:$0xff]  }
 0x3dc   : > { %v1398_v26 = vpop.eup %1397  ;;  %v898_v35 = vpack.c.bf16 %v870_v41, %v868_v22  ;;  %v897_v13 = vpack.c.bf16 %v869_v3, %v867_v15 }
 0x3dd   : > { %v1400_v27 = vpop.eup %1399  ;;  %v866_v5 = vmul.f32 %v1398_v26, %v1933_v52  ;;  %v865_v40 = vmul.f32 %v1398_v26, %v1927_v51 }
 0x3de   : > { %943 = vmatprep.subr.bf16.mxu1 %v898_v35  ;;  %v864_v37 = vmul.f32 %v1400_v27, %v1937_v30  ;;  %v863_v17 = vmul.f32 %v1400_v27, %v1935_v53 }
 0x3df   : > { %944 = vmatpush1.bf16.msra.mxu1 %v897_v13 }
 0x3e0   : > { %v896_v7 = vpack.c.bf16 %v866_v5, %v864_v37  ;;  %v895_v2 = vpack.c.bf16 %v865_v40, %v863_v17 }
 0x3e2   : > { %945 = vmatprep.subr.bf16.mxu1 %v896_v7 }
 0x3e3   : > { %946 = vmatpush1.bf16.msra.mxu1 %v895_v2 }
 0x3e6   : > { %964 = vmatmul.mubr.bf16.vlgmr.msra.gmra.mxu1 %v1303_v21 }
 0x3e7   : > { %973 = vmatprep.mubr.bf16.mxu1 %v1532_v12  ;;  %v916_v12 = vld [vmem:[#allocation3 + $0x20] sm:$0xff] }
 0x3ee   : > { %974 = vmatmul.mubr.bf16.gmra.mxu1 %v1304_v19 }
 0x4a6   : > { %v965_v52 = vpop.f32.mrf.mxu1 }
 0x4a7   : > { %v984_v51 = vadd.f32 %v965_v52, %v911_v8 }
 0x4a8   : > { %v967_v9 = vpop.f32.mrf.mxu1 }
 0x4a9   : > { %992 = vst [vmem:[#allocation3 + $0x30] sm:$0xff] %v984_v51  ;;  %v985_v30 = vadd.f32 %v967_v9, %v912_v48 }
 0x4aa   : > { %v969_v53 = vpop.f32.mrf.mxu1 }
 0x4ab   : > { %993 = vst [vmem:[#allocation3] sm:$0xff] %v985_v30  ;;  %v986_v23 = vadd.f32 %v969_v53, %v913_v58 }
 0x4ac   : > { %v971_v11 = vpop.f32.mrf.mxu1 }
 0x4ad   : > { %994 = vst [vmem:[#allocation3 + $0x18] sm:$0xff] %v986_v23  ;;  %v987_v6 = vadd.f32 %v971_v11, %v914_v20 }
 0x4ae   : > { %v975_v54 = vpop.f32.mrf.mxu1 }
 0x4af   : > { %995 = vst [vmem:[#allocation3 + $0x10] sm:$0xff] %v987_v6  ;;  %v988_v55 = vadd.f32 %v975_v54, %v915_v18 }
 0x4b0   : > { %v977_v46 = vpop.f32.mrf.mxu1 }
 0x4b1   : > { %996 = vst [vmem:[#allocation3 + $0x8] sm:$0xff] %v988_v55  ;;  %v989_v47 = vadd.f32 %v977_v46, %v916_v12 }
 0x4b2   : > { %v979_v31 = vpop.f32.mrf.mxu1 }
 0x4b3   : > { %997 = vst [vmem:[#allocation3 + $0x20] sm:$0xff] %v989_v47  ;;  %v990_v28 = vadd.f32 %v979_v31, %v917_v4  ;;  %1003 = sbr.rel (%p1188_p9) target bundleno = 1220 (0x4c4), region = 48 }
 0x4b4   : > { %v981_v56 = vpop.f32.mrf.mxu1 }
 0x4b5   : > { %998 = vst [vmem:[#allocation3 + $0x28] sm:$0xff] %v990_v28  ;;  %v991_v14 = vadd.f32 %v981_v56, %v918_v42 }
 0x4b7   : > { %999 = vst [vmem:[#allocation3 + $0x38] sm:$0xff] %v991_v14 }
 0x4b8   : > { %v1005_v33 = vld [vmem:[#allocation3 + $0x30] sm:$0xff]  ;;  %v1006_v10 = vld [vmem:[#allocation3] sm:$0xff]  ;;  %v1023_v60 = vld [vmem:[%s1665_s28 + $0x8] sm:$0xff]  ;;  %v1013_v45 = vstv %s1004_s10 }
 0x4b9   : > { %v1022_v29 = vld [vmem:[%s1665_s28] sm:$0xff]  ;;  %v1007_v43 = vld [vmem:[#allocation3 + $0x18] sm:$0xff]  ;;  %v1008_v57 = vld [vmem:[#allocation3 + $0x10] sm:$0xff]  ;;  %v1014_v32 = vmul.f32 %v1013_v45, %v1005_v33  ;;  %v1015_v63 = vmul.f32 %v1013_v45, %v1006_v10 }
 0x4ba   : > { %v1009_v59 = vld [vmem:[#allocation3 + $0x8] sm:$0xff]  ;;  %v1010_v38 = vld [vmem:[#allocation3 + $0x20] sm:$0xff]  ;;  %v1024_v16 = vld [vmem:[%s1665_s28 + $0x10] sm:$0xff]  ;;  %v1016_v49 = vmul.f32 %v1013_v45, %v1007_v43  ;;  %v1017_v25 = vmul.f32 %v1013_v45, %v1008_v57 }
 0x4bb   : > { %v1025_v39 = vld [vmem:[%s1665_s28 + $0x18] sm:$0xff]  ;;  %v1026_v44 = vld [vmem:[%s1665_s28 + $0x20] sm:$0xff]  ;;  %v1027_v0 = vld [vmem:[%s1665_s28 + $0x28] sm:$0xff]  ;;  %v1018_v61 = vmul.f32 %v1013_v45, %v1009_v59  ;;  %v1019_v24 = vmul.f32 %v1013_v45, %v1010_v38  ;;  %v1030_v3 = vadd.f32 %v1022_v29, %v1014_v32  ;;  %v1031_v22 = vadd.f32 %v1023_v60, %v1015_v63 }
 0x4bc   : > { %v1011_v62 = vld [vmem:[#allocation3 + $0x28] sm:$0xff]  ;;  %v1028_v50 = vld [vmem:[%s1665_s28 + $0x30] sm:$0xff]  ;;  %v1029_v34 = vld [vmem:[%s1665_s28 + $0x38] sm:$0xff]  ;;  %v1032_v15 = vadd.f32 %v1024_v16, %v1016_v49  ;;  %v1033_v26 = vadd.f32 %v1025_v39, %v1017_v25 }
 0x4bd   : > { %v1020_v1 = vmul.f32 %v1013_v45, %v1011_v62  ;;  %v1034_v35 = vadd.f32 %v1026_v44, %v1018_v61  ;;  %v1035_v13 = vadd.f32 %v1027_v0, %v1019_v24  ;;  %1038 = vst [vmem:[%s1671_s14] sm:$0xff] %v1030_v3  ;;  %1039 = vst [vmem:[%s1671_s14 + $0x8] sm:$0xff] %v1031_v22 }
 0x4be   : > { %v1012_v36 = vld [vmem:[#allocation3 + $0x38] sm:$0xff]  ;;  %1040 = vst [vmem:[%s1671_s14 + $0x10] sm:$0xff] %v1032_v15  ;;  %1041 = vst [vmem:[%s1671_s14 + $0x18] sm:$0xff] %v1033_v26 }
 0x4bf   : > { %v1021_v41 = vmul.f32 %v1013_v45, %v1012_v36  ;;  %v1036_v27 = vadd.f32 %v1028_v50, %v1020_v1  ;;  %1042 = vst [vmem:[%s1671_s14 + $0x20] sm:$0xff] %v1034_v35  ;;  %1043 = vst [vmem:[%s1671_s14 + $0x28] sm:$0xff] %v1035_v13 }
 0x4c1   : > { %v1037_v5 = vadd.f32 %v1029_v34, %v1021_v41  ;;  %1044 = vst [vmem:[%s1671_s14 + $0x30] sm:$0xff] %v1036_v27 }
 0x4c3   : > { %1045 = vst [vmem:[%s1671_s14 + $0x38] sm:$0xff] %v1037_v5 }
 0x4c4 PF: > { %s1203_s20 = sshll.u32 %s1513_s21, 10  ;;  %s1060_s13 = sshll.u32 %s1671_s14, 4  ;;  %s2002_s13 = int_to_ptr.vmem [resolvable:$true] %s1060_s13 }
 0x4c5   : > { %s1999_s8 = scalar_lea.hbm %s2059_s4, %s1203_s20  ;;  %s1047_s15 = scalar_lea.sflag [#allocation7], %s1661_s11 }
 0x4c6   : > { %s1429_s30 = scalar_lea.vmem %s2002_s13, 1024  ;;  %s1533_s16 = smov [#allocation8]  }
 0x4c7   : > { %p1430_p1 = scmp.ne.s32.totalorder %s2002_s13, %s1429_s30  ;;  %s1433_s3 = sshll.u32 %s1533_s16, 4  ;;  %s1434_s3 = int_to_ptr.vmem [resolvable:$false] %s1433_s3 }
 0x4c8   : > { %s1435_s21 = scalar_lea.vmem %s1434_s3, 2048  ;;  %p1436_p6 = scmp.lt.s32.totalorder %s2002_s13, %s1434_s3 }
 0x4c9   : > { %p1431_p4 = pnand %p1430_p1, %p1627_p10  ;;  %p1437_p7 = scmp.lt.s32.totalorder %s1435_s21, %s1429_s30 }
 0x4cb   : > { %p1432_p5 = pneg %p1431_p4  ;;  %p1438_p8 = por %p1437_p7, %p1436_p6 }
 0x4cd   : > { %p1439_p12 = pnand %p1438_p8, %p1432_p5 }
 0x4cf   : > { %1442 = shalt.err (!%p1439_p12)
}
 0x4d0   : > { %s1443_s14 = scalar_lea.hbm %s1999_s8, 1024  ;;  %s1447_s12 = scalar_lea.hbm %s2059_s4, 2048 }
 0x4d1   : > { %p1444_p3 = scmp.ne.s32.totalorder %s1999_s8, %s1443_s14  ;;  %p1448_p0 = scmp.lt.s32.totalorder %s1999_s8, %s2059_s4 }
 0x4d2   : > { %p1449_p9 = scmp.lt.s32.totalorder %s1447_s12, %s1443_s14 }
 0x4d3   : > { %p1445_p13 = pnand %p1444_p3, %p1627_p10 }
 0x4d4   : > { %p1450_p1 = por %p1449_p9, %p1448_p0 }
 0x4d5   : > { %p1446_p2 = pneg %p1445_p13 }
 0x4d7   : > { %p1451_p4 = pnand %p1450_p1, %p1446_p2 }
 0x4d9   : > { %1454 = shalt.err (!%p1451_p4)
}
 0x4da   : > { %s1534_s28 = smov 256   ;;  %s1535_s29 = smov 16  }
 0x4db   : > { %1210 = dma.vmem_to_hbm [thread:$0]  (%p1627_p10), %s2002_s13, 1024, %s1999_s8, %s1047_s15, %s1534_s28, %s1534_s28, %s1535_s29  }
 0x4dc PF: > { %p1221_p5 = scmp.ge.s32.totalorder %s1525_s24, 2  ;;  %s1075_s30 = sand.u32 1, %s1497_s17  }
 0x4dd   : > { %s1076_s16 = scalar_lea.sflag [#allocation7], %s1075_s30 }
 0x4de   : > { %p1217_p6 = pnand %p1221_p5, %p1633_p11 }
 0x4e0   : > { %p1218_p7 = pneg %p1217_p6 }
 0x4e2   : > { %1492 = dma.done.wait (%p1218_p7), %s1076_s16, 1024  }
 0x4e3   : > { %1494 = vsyncadd (%p1218_p7), %s1076_s16, 4294966272  ;;  %s21_s24 = sadd.s32 1, %s1525_s24   ;;  %s2065_s17 = smov %s1501_s18 }
 0x4e4   : > { %p18_p8 = scmp.ge.s32.totalorder %s21_s24, 6   ;;  %s2066_s18 = smov %s1505_s19 }
 0x4e5   : > { %s2067_s19 = smov %s1640_s9  ;;  %s2068_s20 = smov %s1517_s22 }
 0x4e6   : > { %s2069_s21 = smov %s1521_s23  ;;  %s2070_s22 = smov %s2073_s26 }
 0x4e7   : > { %s2071_s23 = smov %s2077_s27  ;;  %20 = sbr.rel (!%p18_p8) target bundleno = 9 (0x9), region = 90 }
 0x4ec   :  { %1081 = vsyncpa [#allocation6], 1 }
 0x4ed   :  { %1083 = vsyncpa [#allocation6 + $0x1], 1 }
 0x4ee   :  { %1084 = vsyncpa [#allocation7], 1 }
 0x4ef   :  { %1086 = vsyncpa [#allocation7 + $0x1], 1 }

</bundles_post_ra>
